<compile_context>
chip_gen: v6e
topology: v6e:2x2x1
jax: 0.10.0
libtpu: 0.0.40
codegen_flags: <defaults>
</compile_context>

<pallas_src>
import jax
import jax.numpy as jnp
from jax.experimental import pallas as pl
from jax.experimental.pallas import tpu as pltpu


def _round_up(x: int, m: int) -> int:
    return ((x + m - 1) // m) * m


def _vmem_limit_bytes() -> int:
    """Generation-aware scoped-VMEM limit (v5e/v6e: 128 MiB, v7x: 64 MiB)."""
    try:
        cap = int(pltpu.get_tpu_info().vmem_capacity_bytes)
    except Exception:  # query unavailable -> assume the smallest (v7x) budget
        cap = 64 << 20
    limit = min((cap * 3) // 4, 112 << 20)
    return max(limit, 32 << 20)


# ----------------------------------------------------------------------------
# Pallas kernel: y = x @ W^T + b   (nn.Linear semantics; W^T is pre-cached)
# ----------------------------------------------------------------------------
def _linear_kernel(x_ref, wt_ref, b_ref, o_ref):
    # x_ref : (tm, tk) f32  (cast to bf16 in-kernel; saves a wrapper HBM pass)
    # wt_ref: (tk, tn) bf16
    # b_ref : (1,  tn) f32
    # o_ref : (tm, tn) f32  -- block index constant over k, so it is the
    #                          resident accumulator (no VMEM scratch needed)
    k = pl.program_id(2)
    part = jnp.dot(
        x_ref[...].astype(jnp.bfloat16),
        wt_ref[...],
        preferred_element_type=jnp.float32,
    )

    @pl.when(k == 0)
    def _():
        o_ref[...] = part + b_ref[...]

    @pl.when(k > 0)
    def _():
        o_ref[...] += part


def pallas_linear(x2d, wt, b, *, tm, tn, tk, grid, vmem_limit):
    """x2d: (Mp, Kp) f32, wt: (Kp, Np) bf16, b: (1, Np) f32.
    All padded dims are exact multiples of the corresponding tile sizes."""
    Mp, Kp = x2d.shape
    Np = wt.shape[1]
    gi, gj, gk = grid

    cost = pl.CostEstimate(
        flops=2 * Mp * Kp * Np,
        transcendentals=0,
        # account for x / W re-streaming implied by the tiled grid
        bytes_accessed=int(
            gj * Mp * Kp * x2d.dtype.itemsize
            + gi * Kp * Np * 2
            + Mp * Np * 4
            + Np * 4
        ),
    )

    return pl.pallas_call(
        _linear_kernel,
        out_shape=jax.ShapeDtypeStruct((Mp, Np), jnp.float32),
        grid=(gi, gj, gk),
        in_specs=[
            pl.BlockSpec((tm, tk), lambda i, j, k: (i, k)),
            pl.BlockSpec((tk, tn), lambda i, j, k: (k, j)),
            pl.BlockSpec((1, tn), lambda i, j, k: (0, j)),
        ],
        out_specs=pl.BlockSpec((tm, tn), lambda i, j, k: (i, j)),
        compiler_params=pltpu.CompilerParams(
            dimension_semantics=("parallel", "parallel", "arbitrary"),
            vmem_limit_bytes=int(vmem_limit),
        ),
        cost_estimate=cost,
    )(x2d, wt, b)


# ----------------------------------------------------------------------------
# ModelBase equivalent (JAX side).  State flags / checkpoint wrapper are glue.
# ----------------------------------------------------------------------------
class ModelBaseJAX:
    registered_name = "model_base"

    def __init__(self, hidden_in, hidden_out, do_grad_checkpoint=False):
        self.ema_mode = False
        self.infer_mode = False
        self.training = True
        self.do_grad_checkpoint = do_grad_checkpoint
        self.custom_inited = False

        self.hidden_in = hidden_in
        self.hidden_out = hidden_out

        self._vmem_limit = _vmem_limit_bytes()

        # Parameters (shapes mirror nn.Linear(hidden_in, hidden_out)).
        self.weight = jnp.zeros((hidden_out, hidden_in), jnp.float32)
        self.bias = jnp.zeros((hidden_out,), jnp.float32)

        self._prepare_kernel_params()

    # --- state management (no compute) ----------------------------------
    def set_ema_mode(self, ema_mode):
        self.ema_mode = ema_mode

    def set_infer_mode(self, infer_mode):
        self.infer_mode = infer_mode

    def print_states(self, prefix=""):
        print(f"{prefix}Model --- training mode: {self.training}, "
              f"infer_mode: {self.infer_mode}, ema_mode: {self.ema_mode}")

    # --- _fn_vanilla_custom_init equivalent ------------------------------
    def _custom_init_all(self, key, std=0.02):
        # nn.Linear branch: weight ~ N(0, std^2), bias = 0
        self.weight = std * jax.random.normal(key, self.weight.shape, jnp.float32)
        self.bias = jnp.zeros_like(self.bias)
        self.custom_inited = True
        self._prepare_kernel_params()

    def set_params(self, weight, bias):
        """Update parameters AND refresh the cached kernel-ready weights
        (avoids the staleness hazard of mutating self.weight directly)."""
        self.weight = weight
        self.bias = bias
        self._prepare_kernel_params()

    # --- cache kernel-ready (transposed / padded / bf16) parameters ------
    def _prepare_kernel_params(self):
        K, N = self.hidden_in, self.hidden_out
        limit = self._vmem_limit
        # Single-copy weight-slab budget: x2 pipeline buffers stay <= 2/3 of
        # the limit, leaving >= 1/3 for x / output row tiles.
        w_budget = limit // 3

        Np0 = _round_up(N, 128)
        Kp0 = _round_up(K, 128)

        # N tiling: keep the full (lane-dense) output width as one slab when
        # the whole transposed weight fits the budget (weight-resident path).
        if Kp0 * Np0 * 2 <= w_budget:
            gj, tn = 1, Np0
        else:
            gj = pl.cdiv(Np0, 512)
            tn = _round_up(pl.cdiv(Np0, gj), 128)

        # K tiling: drop the reduction grid axis entirely when the (Kp x tn)
        # weight column slab fits -> one dot per (i, j), no accumulation loop.
        if Kp0 * tn * 2 <= w_budget:
            gk, tk = 1, Kp0
        else:
            gk = pl.cdiv(Kp0, 2048)
            tk = _round_up(pl.cdiv(Kp0, gk), 128)

        Np, Kp = tn * gj, tk * gk

        wt = self.weight.T                                   # (K, N), once
        if Kp != K or Np != N:
            wt = jnp.pad(wt, ((0, Kp - K), (0, Np - N)))
        self._wt = wt.astype(jnp.bfloat16)                   # cached bf16 W^T
        b = self.bias if Np == N else jnp.pad(self.bias, (0, Np - N))
        self._b = b.astype(jnp.float32).reshape(1, Np)

        self._tn, self._tk = tn, tk
        self._gj, self._gk = gj, gk
        self._Np, self._Kp = Np, Kp

    # --- row-axis (M) plan, derived at call time --------------------------
    def _plan_m(self, M):
        Mp0 = _round_up(max(M, 8), 8)
        # VMEM left after double-buffered weight slab, for double-buffered
        # f32 x tiles + double-buffered f32 output tiles.
        remaining = max(self._vmem_limit - 2 * (self._tk * self._tn * 2), 1 << 20)
        bytes_per_row = 8 * self._tk + 8 * self._tn
        tm_cap = max(8, (remaining // bytes_per_row) // 8 * 8)

        gi = pl.cdiv(Mp0, 512)
        # Dual-TensorCore chips (v7x): keep >= 2 parallel blocks when the N
        # axis has a single block and there is enough row work to split.
        if gi == 1 and self._gj == 1 and Mp0 >= 256:
            gi = 2
        tm = min(_round_up(pl.cdiv(Mp0, gi), 8), tm_cap, 512)
        gi = pl.cdiv(Mp0, tm)
        Mp = tm * gi
        return Mp, tm, gi

    # --- _grad_checkpoint equivalent --------------------------------------
    def _grad_checkpoint(self, func, *args):
        if self.do_grad_checkpoint and self.training:
            return jax.checkpoint(func)(*args)
        return func(*args)

    # --- forward -----------------------------------------------------------
    # TODO(synk): base-class forward() raises NotImplementedError in PyTorch;
    # this is the minimal concrete instantiation (single Linear hot path).
    def forward(self, inputs: dict) -> dict:
        x = inputs["x"]                       # (B, S, H_in)
        B, S, H_in = x.shape
        M = B * S
        Mp, tm, gi = self._plan_m(M)
        Kp, Np = self._Kp, self._Np
        H_out = self.hidden_out

        def _fwd(x_):
            x2d = x_.reshape(M, H_in).astype(jnp.float32)
            if Mp != M or Kp != H_in:        # pad only when not tile-aligned
                x2d = jnp.pad(x2d, ((0, Mp - M), (0, Kp - H_in)))
            y = pallas_linear(
                x2d, self._wt, self._b,
                tm=tm, tn=self._tn, tk=self._tk,
                grid=(gi, self._gj, self._gk),
                vmem_limit=self._vmem_limit)
            if Mp != M or Np != H_out:       # slice is a no-op when aligned
                y = y[:M, :H_out]
            return y.reshape(B, S, H_out)

        y = self._grad_checkpoint(_fwd, x)
        return {"y": y}


if __name__ == "__main__":
    B, S, H = 2, 8, 32
    key = jax.random.PRNGKey(0)
    k_x, k_w = jax.random.split(key)

    x = jax.random.normal(k_x, (B, S, H), jnp.float32)

    model = ModelBaseJAX(hidden_in=H, hidden_out=H, do_grad_checkpoint=False)
    model._custom_init_all(k_w, std=0.02)
    model.set_infer_mode(True)
    model.training = False

    out = model.forward({"x": x})
    y = jax.block_until_ready(out["y"])

    # correctness check against a plain-JAX reference at matching precision
    # (bf16 operands, f32 accumulation, f32 bias)
    x2d = x.reshape(B * S, H).astype(jnp.bfloat16)
    w_bf16 = model.weight.T.astype(jnp.bfloat16)
    y_ref = jnp.dot(x2d, w_bf16, preferred_element_type=jnp.float32) + model.bias
    assert y.shape == (B, S, H)
    assert y.dtype == jnp.float32
    assert jnp.allclose(y.reshape(B * S, H), y_ref, atol=1e-4, rtol=1e-4), (
        float(jnp.max(jnp.abs(y.reshape(B * S, H) - y_ref))))

    print("KERNEL_OK")
</pallas_src>

<mosaic_0001>
module attributes {stable_mosaic.version = 11 : i64} {
  func.func @_linear_kernel(%arg0: i32, %arg1: i32, %arg2: i32, %arg3: memref<16x128xf32, #tpu.memory_space<vmem>>, %arg4: memref<128x128xbf16, #tpu.memory_space<vmem>>, %arg5: memref<1x128xf32, #tpu.memory_space<vmem>>, %arg6: memref<16x128xf32, #tpu.memory_space<vmem>>) attributes {dimension_semantics = [#tpu.dimension_semantics<parallel>, #tpu.dimension_semantics<parallel>, #tpu.dimension_semantics<arbitrary>], iteration_bounds = array<i64: 1, 1, 1>, scalar_prefetch = 0 : i64, scratch_operands = 0 : i64, tpu.core_type = #tpu.core_type<tc>, window_params = [{transform_indices = @transform_0, window_bounds = array<i64: 16, 128>}, {transform_indices = @transform_1, window_bounds = array<i64: 128, 128>}, {transform_indices = @transform_2, window_bounds = array<i64: 1, 128>}, {transform_indices = @transform_3, window_bounds = array<i64: 16, 128>}]} {
    %c0 = arith.constant 0 : index
    %c0_0 = arith.constant 0 : index
    %0 = vector.load %arg3[%c0, %c0_0] : memref<16x128xf32, #tpu.memory_space<vmem>>, vector<16x128xf32>
    %1 = arith.truncf %0 : vector<16x128xf32> to vector<16x128xbf16>
    %c0_1 = arith.constant 0 : index
    %c0_2 = arith.constant 0 : index
    %2 = vector.load %arg4[%c0_1, %c0_2] : memref<128x128xbf16, #tpu.memory_space<vmem>>, vector<128x128xbf16>
    %cst = arith.constant dense<0.000000e+00> : vector<16x128xf32>
    %3 = tpu.matmul %1, %2, %cst {dimension_numbers = #tpu.dot_dimension_numbers<[1], [0], [0], [1], [0, 0, 1, 1], [], []>} : vector<16x128xbf16>, vector<128x128xbf16>, vector<16x128xf32> -> vector<16x128xf32>
    %c0_i32 = arith.constant 0 : i32
    %4 = arith.cmpi eq, %arg2, %c0_i32 : i32
    %5 = arith.extui %4 : i1 to i32
    %c0_i32_3 = arith.constant 0 : i32
    %6 = arith.cmpi ne, %5, %c0_i32_3 : i32
    scf.if %6 {
      %c0_6 = arith.constant 0 : index
      %c0_7 = arith.constant 0 : index
      %10 = vector.load %arg5[%c0_6, %c0_7] : memref<1x128xf32, #tpu.memory_space<vmem>>, vector<1x128xf32>
      %11 = vector.broadcast %10 : vector<1x128xf32> to vector<16x128xf32>
      %12 = arith.addf %3, %11 : vector<16x128xf32>
      %c0_8 = arith.constant 0 : index
      %c0_9 = arith.constant 0 : index
      %13 = vector.load %arg6[%c0_8, %c0_9] : memref<16x128xf32, #tpu.memory_space<vmem>>, vector<16x128xf32>
      tpu.vector_store %arg6[%c0_8, %c0_9], %12 {strides = array<i32>} : memref<16x128xf32, #tpu.memory_space<vmem>>, vector<16x128xf32>,
    } else {
    }
    %c0_i32_4 = arith.constant 0 : i32
    %7 = arith.cmpi sgt, %arg2, %c0_i32_4 : i32
    %8 = arith.extui %7 : i1 to i32
    %c0_i32_5 = arith.constant 0 : i32
    %9 = arith.cmpi ne, %8, %c0_i32_5 : i32
    scf.if %9 {
      %c0_6 = arith.constant 0 : index
      %c0_7 = arith.constant 0 : index
      %10 = vector.load %arg6[%c0_6, %c0_7] : memref<16x128xf32, #tpu.memory_space<vmem>>, vector<16x128xf32>
      %11 = arith.addf %10, %3 : vector<16x128xf32>
      %c0_8 = arith.constant 0 : index
      %c0_9 = arith.constant 0 : index
      %12 = vector.load %arg6[%c0_8, %c0_9] : memref<16x128xf32, #tpu.memory_space<vmem>>, vector<16x128xf32>
      tpu.vector_store %arg6[%c0_8, %c0_9], %11 {strides = array<i32>} : memref<16x128xf32, #tpu.memory_space<vmem>>, vector<16x128xf32>,
    } else {
    }
    return
  }
  func.func @transform_0(%arg0: i32, %arg1: i32, %arg2: i32) -> (i32, i32) {
    %c0_i32 = arith.constant 0 : i32
    return %arg0, %arg2 : i32, i32
  }
  func.func @transform_1(%arg0: i32, %arg1: i32, %arg2: i32) -> (i32, i32) {
    %c0_i32 = arith.constant 0 : i32
    return %arg2, %arg1 : i32, i32
  }
  func.func @transform_2(%arg0: i32, %arg1: i32, %arg2: i32) -> (i32, i32) {
    %c0_i32 = arith.constant 0 : i32
    %c0_i32_0 = arith.constant 0 : i32
    return %c0_i32, %arg1 : i32, i32
  }
  func.func @transform_3(%arg0: i32, %arg1: i32, %arg2: i32) -> (i32, i32) {
    %c0_i32 = arith.constant 0 : i32
    return %arg0, %arg1 : i32, i32
  }
}

</mosaic_0001>

<bundles_post_ra>
// kernel: tpu_custom_call.1
= control target key start
LH: loop header
LB: loop body
LE: loop exit
PB: predicated region body
PF: predicated region fallthrough
CT: control target
= control target key end

     0   :  { %8 = vsyncpa [#allocation3], 0  ;;  %s363_s0 = inlined_call_operand.hbm [shape: f32[16,128], index: 0, kind: input, shape index: {}]   ;;  %s364_s1 = inlined_call_operand.hbm [shape: bf16[128,128], index: 1, kind: input, shape index: {}]   ;;  %s365_s2 = inlined_call_operand.vmem [shape: f32[1,128], index: 2, kind: input, shape index: {}]   ;;  %s366_s3 = inlined_call_operand.hbm [shape: f32[16,128], index: 3, kind: output, shape index: {}]  }
   0x1   :  { %9 = vsyncpa [#allocation6], 0 }
   0x2   :  { %10 = vsyncpa [#allocation4], 0  ;;  %s316_s12 = smov [#allocation2]  }
   0x3   :  { %s16_s13 = sshll.u32 %s316_s12, 4  ;;  %s17_s13 = int_to_ptr.vmem [resolvable:$true] %s16_s13 }
   0x4   :  { %s258_s14 = scalar_lea.vmem %s17_s13, 256  ;;  %p263_p1 = scmp.lt.s32.totalorder %s17_s13, %s17_s13 }
   0x5   :  { %p259_p0 = scmp.ne.s32.totalorder %s17_s13, %s258_s14  ;;  %p264_p2 = scmp.lt.s32.totalorder %s258_s14, %s258_s14 }
   0x7   :  { %p265_p3 = por %p264_p2, %p263_p1 }
   0x9   :  { %p266_p4 = pnand %p265_p3, %p259_p0 }
   0xb   :  { %269 = shalt.err (!%p266_p4)
}
   0xc   :  { %s317_s15 = smov 128   ;;  %s318_s16 = smov 8  }
   0xd   :  { %22 = dma.hbm_to_vmem [thread:$0]  %s363_s0, 256, %s17_s13, [#allocation3], %s317_s15, %s317_s15, %s318_s16  }
   0xe   :  { %s319_s19 = smov [#allocation5]  }
   0xf   :  { %s28_s20 = sshll.u32 %s319_s19, 4  ;;  %s29_s20 = int_to_ptr.vmem [resolvable:$true] %s28_s20 }
  0x10   :  { %s278_s21 = scalar_lea.vmem %s29_s20, 1024  ;;  %p283_p6 = scmp.lt.s32.totalorder %s29_s20, %s29_s20 }
  0x11   :  { %p279_p5 = scmp.ne.s32.totalorder %s29_s20, %s278_s21  ;;  %p284_p7 = scmp.lt.s32.totalorder %s278_s21, %s278_s21 }
  0x13   :  { %p285_p8 = por %p284_p7, %p283_p6 }
  0x15   :  { %p286_p9 = pnand %p285_p8, %p279_p5 }
  0x17   :  { %289 = shalt.err (!%p286_p9)
}
  0x18   :  { %s320_s22 = smov 64   ;;  %s321_s23 = smov 4  }
  0x19   :  { %34 = dma.hbm_to_vmem [thread:$0]  %s364_s1, 1024, %s29_s20, [#allocation6], %s320_s22, %s320_s22, %s321_s23  }
  0x1a   :  { %310 = dma.done.wait [#allocation3], 256  }
  0x1b   :  { %311 = vsyncadd [#allocation3], 4294967040 }
  0x1c   :  { %312 = dma.done.wait [#allocation6], 1024  }
  0x1d   :  { %313 = vsyncadd [#allocation6], 4294966272  ;;  %v322_v0 = vmov 0.0   ;;  %vm323_vm0 = vmmov 0   ;;  %v242_v1 = vld [vmem:[#allocation5 + $0x38] sm:$0xff]   ;;  %v243_v2 = vld [vmem:[#allocation5 + $0x30] sm:$0xff]  }
  0x1e   :  { %213 = vmatprep.subr.bf16.mxu0 %v322_v0  ;;  %229 = vmatprep.mubr.msk.bf16.mxu0 %vm323_vm0, %v322_v0  ;;  %v244_v3 = vld [vmem:[#allocation5 + $0x28] sm:$0xff]   ;;  %v245_v4 = vld [vmem:[#allocation5 + $0x20] sm:$0xff]   ;;  %v246_v5 = vld [vmem:[#allocation5 + $0x18] sm:$0xff]   ;;  %s324_s26 = smov [#allocation7]  }
  0x1f   :  { %214 = vmatpush3.bf16.msra.mxu0 %v242_v1  ;;  %v247_v6 = vld [vmem:[#allocation5 + $0x10] sm:$0xff]   ;;  %v248_v7 = vld [vmem:[#allocation5 + $0x8] sm:$0xff]   ;;  %v249_v8 = vld [vmem:[#allocation5] sm:$0xff]   ;;  %s182_s27 = sshll.u32 %s324_s26, 4  ;;  %s183_s27 = int_to_ptr.vmem [resolvable:$true] %s182_s27 }
  0x20   :  { %215 = vmatprep.subr.bf16.mxu0 %v322_v0  ;;  %v44_v9 = vld [vmem:[#allocation2] sm:$0xff]  ;;  %v45_v10 = vld [vmem:[#allocation2 + $0x8] sm:$0xff]  ;;  %s290_s28 = scalar_lea.vmem %s183_s27, 256  ;;  %p295_p11 = scmp.lt.s32.totalorder %s183_s27, %s183_s27 }
  0x21   :  { %v46_v11 = vpack.c.bf16 %v45_v10, %v44_v9  ;;  %v203_v12 = vld [vmem:[%s365_s2] ss:$0 sm:$0xff]  ;;  %p291_p10 = scmp.ne.s32.totalorder %s183_s27, %s290_s28  ;;  %p296_p12 = scmp.lt.s32.totalorder %s290_s28, %s290_s28 }
  0x23   :  { %216 = vmatpush3.bf16.msra.mxu0 %v243_v2  ;;  %p297_p13 = por %p296_p12, %p295_p11 }
  0x24   :  { %217 = vmatprep.subr.bf16.mxu0 %v322_v0 }
  0x25   :  { %p298_p0 = pnand %p297_p13, %p291_p10 }
  0x27   :  { %218 = vmatpush3.bf16.msra.mxu0 %v244_v3 }
  0x28   :  { %219 = vmatprep.subr.bf16.mxu0 %v322_v0 }
  0x2b   :  { %220 = vmatpush3.bf16.msra.mxu0 %v245_v4 }
  0x2c   :  { %221 = vmatprep.subr.bf16.mxu0 %v322_v0 }
  0x2f   :  { %222 = vmatpush3.bf16.msra.mxu0 %v246_v5 }
  0x30   :  { %223 = vmatprep.subr.bf16.mxu0 %v322_v0 }
  0x33   :  { %224 = vmatpush3.bf16.msra.mxu0 %v247_v6 }
  0x34   :  { %225 = vmatprep.subr.bf16.mxu0 %v322_v0 }
  0x37   :  { %226 = vmatpush3.bf16.msra.mxu0 %v248_v7 }
  0x38   :  { %227 = vmatprep.subr.bf16.mxu0 %v322_v0 }
  0x3b   :  { %228 = vmatpush3.bf16.msra.mxu0 %v249_v8 }
  0x3e   :  { %230 = vmatmul.mubr.bf16.vlgmr.msra.gmra.mxu0 %v46_v11 }
  0xfe   :  { %v145_v13 = vpop.f32.mrf.mxu0 }
  0xff   :  { %v163_v14 = vadd.f32 %v203_v12, %v145_v13 }
 0x100   :  { %v231_v15 = vpop.f32.mrf.mxu0 }
 0x101   :  { %165 = vst [vmem:[#allocation7] sm:$0xff] %v163_v14 }
 0x102   :  { %v148_v16 = vpop.f32.mrf.mxu0 }
 0x103   :  { %v164_v17 = vadd.f32 %v203_v12, %v148_v16 }
 0x104   :  { %v232_v18 = vpop.f32.mrf.mxu0 }
 0x105   :  { %166 = vst [vmem:[#allocation7 + $0x8] sm:$0xff] %v164_v17 }
 0x106   :  { %301 = shalt.err (!%p298_p0)
}
 0x107   :  { %188 = dma.vmem_to_hbm [thread:$0]  %s183_s27, 256, %s366_s3, [#allocation4], %s317_s15, %s317_s15, %s318_s16  }
 0x108   :  { %314 = dma.done.wait [#allocation4], 256  }
 0x109   :  { %315 = vsyncadd [#allocation4], 4294967040 }
 0x10a   :  { %192 = vsyncpa [#allocation3], 1 }
 0x10b   :  { %193 = vsyncpa [#allocation6], 1 }
 0x10c   :  { %194 = vsyncpa [#allocation4], 1 }

</bundles_post_ra>
